<compile_context>
chip_gen: v7x
topology: tpu7x:2x2x1
jax: 0.10.0
libtpu: 0.0.40
codegen_flags: <defaults>
</compile_context>

<pallas_src>
import functools

import jax
import jax.numpy as jnp
from jax import lax
from jax.experimental import pallas as pl
from jax.experimental.pallas import tpu as pltpu

_LANE = 128
_SUBLANE = 8
_CLASS_TILE = 512  # lane tile for the output/class dimension


def _round_up(x, m):
    return (x + m - 1) // m * m


def _gelu(h, approximate):
    if approximate:
        # tanh form -> transcendental goes to the EUP slot (frees VALU on v6e/v7x).
        c = 0.7978845608028654  # sqrt(2/pi)
        return 0.5 * h * (1.0 + jnp.tanh(c * (h + 0.044715 * h * h * h)))
    # exact erf form: matches torch.nn.GELU() default.
    return 0.5 * h * (1.0 + lax.erf(h * 0.7071067811865476))


def _classifier_head_kernel(x_ref, w1_ref, b1_ref, gamma_ref, beta_ref,
                            w2_ref, b2_ref, o_ref, normed_ref, *,
                            hidden_dim, eps, approximate_gelu):
    # Grid = (batch tiles, class tiles).  The expensive projection + GELU +
    # LayerNorm depends only on the batch tile, so compute it once per batch
    # tile (class step j == 0) into a resident bf16 VMEM scratch and reuse it
    # for every class tile of the same batch tile.
    @pl.when(pl.program_id(1) == 0)
    def _():
        xb = x_ref[...].astype(w1_ref.dtype)  # cast on the VPU (hidden under MXU)
        h = jnp.dot(xb, w1_ref[...], preferred_element_type=jnp.float32)
        h = h + b1_ref[...]
        g = _gelu(h, approximate_gelu)
        # Dropout(p=0.1): identity in eval / inference mode.
        # TODO(synk): training-mode dropout (pltpu.prng_* masking) not emitted.

        # LayerNorm over the real hidden lanes.  Padded lanes of g are exactly
        # 0 (W1 pad columns / b1 pad lanes are 0 and GELU(0)=0), so plain lane
        # sums already give correct statistics -- no iota/where mask needed.
        inv_h = 1.0 / float(hidden_dim)
        mean = jnp.sum(g, axis=-1, keepdims=True) * inv_h
        var = jnp.sum(g * g, axis=-1, keepdims=True) * inv_h - mean * mean
        normed = (g - mean) * lax.rsqrt(var + eps)
        # gamma/beta pad lanes are 0, so padded lanes of `normed` stay 0.
        normed = normed * gamma_ref[...] + beta_ref[...]
        normed_ref[...] = normed.astype(normed_ref.dtype)

    # fc: normed @ W2[:, class tile] + b2[class tile]  (MXU bf16, f32 acc)
    out = jnp.dot(normed_ref[...], w2_ref[...],
                  preferred_element_type=jnp.float32)
    o_ref[...] = (out + b2_ref[...]).astype(o_ref.dtype)


def _vmem_capacity_bytes():
    try:
        cap = getattr(pltpu.get_tpu_info(), "vmem_capacity_bytes", None)
        if cap:
            return int(cap)
    except Exception:
        pass
    return 64 << 20  # conservative fallback (v7x per-TensorCore VMEM)


def _estimate_vmem_bytes(block_b, in_p, hid_p, tn, w_bytes, out_bytes):
    single = in_p * hid_p * w_bytes + 3 * hid_p * 4            # W1 + b1/gamma/beta (Buffered(1))
    double = 2 * (hid_p * tn * w_bytes + tn * 4                # W2 / b2 class tiles
                  + block_b * in_p * 4                         # x tile (worst case f32)
                  + block_b * tn * out_bytes)                  # out tile
    scratch = block_b * hid_p * w_bytes                        # resident `normed`
    inter = 3 * block_b * hid_p * 4                            # live f32 h/g temporaries
    return single + double + scratch + inter


def prepare_params(params, *, weight_dtype=jnp.bfloat16):
    """Zero-pad feature dims to lane multiples; cast matmul weights to bf16.

    Zero padding is load-bearing: the kernel's LayerNorm statistics and padded
    output lanes rely on W1 pad columns, b1/gamma/beta pad lanes and W2 pad
    rows being exactly 0.
    """
    in_d, hid_d = params["w1"].shape
    out_d = params["w2"].shape[1]
    in_p = _round_up(in_d, _LANE)
    hid_p = _round_up(hid_d, _LANE)
    out_p = _round_up(out_d, _LANE)
    if out_p > _CLASS_TILE:                    # make the class grid tile evenly
        out_p = _round_up(out_p, _CLASS_TILE)

    def pad2(a, rows, cols):
        a = a.reshape((1, -1)) if a.ndim == 1 else a
        return jnp.pad(a, ((0, rows - a.shape[0]), (0, cols - a.shape[1])))

    return {
        "w1": pad2(params["w1"], in_p, hid_p).astype(weight_dtype),
        "b1": pad2(params["b1"], 1, hid_p).astype(jnp.float32),
        "gamma": pad2(params["gamma"], 1, hid_p).astype(jnp.float32),
        "beta": pad2(params["beta"], 1, hid_p).astype(jnp.float32),
        "w2": pad2(params["w2"], hid_p, out_p).astype(weight_dtype),
        "b2": pad2(params["b2"], 1, out_p).astype(jnp.float32),
        "dims": (in_d, hid_d, out_d),
    }


def classifier_head(x, p, *, block_b=None, eps=1e-5,
                    approximate_gelu=False, out_dtype=jnp.float32):
    """x: (B, input_dim) f32 (or bf16).  p: output of prepare_params.

    approximate_gelu=True selects the tanh GELU (EUP fast path on v6e/v7x);
    the default exact erf matches torch.nn.GELU().  out_dtype=bf16 halves the
    output writeback if the consumer accepts it.
    """
    in_d, hid_d, out_d = p["dims"]
    B = x.shape[0]
    in_p, hid_p = p["w1"].shape
    out_p = p["w2"].shape[1]
    assert in_p % _LANE == 0 and hid_p % _LANE == 0 and out_p % _LANE == 0
    w_bytes = jnp.dtype(p["w1"].dtype).itemsize
    out_bytes = jnp.dtype(out_dtype).itemsize

    vmem_cap = _vmem_capacity_bytes()
    budget = (vmem_cap * 3) // 4

    # Class tile: lane-dense multiple of 128 that divides the padded class dim.
    tn = min(out_p, _CLASS_TILE)
    while out_p % tn:
        tn -= _LANE

    # Batch tile: per-chip default (512 on 128 MiB VMEM v5e/v6e, 256 on v7x),
    # capped so the batch grid has >= 2 steps (v7x dual-TC sharding), then
    # shrunk until the estimated footprint fits the VMEM budget.
    if block_b is None:
        block_b = 256 if vmem_cap <= (96 << 20) else 512
        if B <= 2 * block_b:
            block_b = max(_SUBLANE, _round_up(-(-B // 2), _SUBLANE))
    block_b = _round_up(block_b, _SUBLANE)
    block_b = min(block_b, _round_up(B, _SUBLANE))
    while block_b > _SUBLANE and _estimate_vmem_bytes(
            block_b, in_p, hid_p, tn, w_bytes, out_bytes) > budget:
        block_b = max(_SUBLANE, _round_up(block_b // 2, _SUBLANE))

    B_p = _round_up(B, block_b)

    # Pad only when shapes are unaligned; fold the bf16 cast into the same
    # pass.  When already aligned, pass f32 straight through and cast in the
    # kernel on the VPU (avoids an extra HBM round trip).
    if B_p != B or in_p != in_d:
        x_in = jnp.pad(x, ((0, B_p - B), (0, in_p - in_d))).astype(p["w1"].dtype)
    else:
        x_in = x

    grid = (B_p // block_b, out_p // tn)
    kernel = functools.partial(_classifier_head_kernel, hidden_dim=hid_d,
                               eps=eps, approximate_gelu=approximate_gelu)
    resident = pl.Buffered(1)  # grid-invariant operands: single-buffer

    est = _estimate_vmem_bytes(block_b, in_p, hid_p, tn, w_bytes, out_bytes)
    vmem_limit = int(min(budget, max(32 << 20, int(est * 1.5))))

    out = pl.pallas_call(
        kernel,
        out_shape=jax.ShapeDtypeStruct((B_p, out_p), out_dtype),
        grid_spec=pltpu.PrefetchScalarGridSpec(
            num_scalar_prefetch=0,
            grid=grid,
            in_specs=[
                pl.BlockSpec((block_b, in_p), lambda i, j: (i, 0)),      # x tile
                pl.BlockSpec((in_p, hid_p), lambda i, j: (0, 0),
                             pipeline_mode=resident),                    # W1
                pl.BlockSpec((1, hid_p), lambda i, j: (0, 0),
                             pipeline_mode=resident),                    # b1
                pl.BlockSpec((1, hid_p), lambda i, j: (0, 0),
                             pipeline_mode=resident),                    # gamma
                pl.BlockSpec((1, hid_p), lambda i, j: (0, 0),
                             pipeline_mode=resident),                    # beta
                pl.BlockSpec((hid_p, tn), lambda i, j: (0, j)),          # W2 tile
                pl.BlockSpec((1, tn), lambda i, j: (0, j)),              # b2 tile
            ],
            out_specs=pl.BlockSpec((block_b, tn), lambda i, j: (i, j)),
            scratch_shapes=[pltpu.VMEM((block_b, hid_p), p["w2"].dtype)],
        ),
        compiler_params=pltpu.CompilerParams(
            dimension_semantics=("parallel", "arbitrary"),
            vmem_limit_bytes=vmem_limit,
        ),
    )(x_in, p["w1"], p["b1"], p["gamma"], p["beta"], p["w2"], p["b2"])

    # Strip batch / class padding.
    return out[:B, :out_d]


def init_params(key, input_dim, hidden_dim, output_dim):
    k1, k2, k3, k4 = jax.random.split(key, 4)
    lim1 = 1.0 / jnp.sqrt(input_dim)
    lim2 = 1.0 / jnp.sqrt(hidden_dim)
    return {
        # stored transposed: (in, out)
        "w1": jax.random.uniform(k1, (input_dim, hidden_dim),
                                 jnp.float32, -lim1, lim1),
        "b1": jax.random.uniform(k2, (hidden_dim,), jnp.float32, -lim1, lim1),
        "gamma": jnp.ones((hidden_dim,), jnp.float32),
        "beta": jnp.zeros((hidden_dim,), jnp.float32),
        "w2": jax.random.uniform(k3, (hidden_dim, output_dim),
                                 jnp.float32, -lim2, lim2),
        "b2": jax.random.uniform(k4, (output_dim,), jnp.float32, -lim2, lim2),
    }


def _reference(x, p, *, eps=1e-5, approximate_gelu=False):
    """f32 reference applying the same bf16 quantization of x / W1 / W2 / the
    pre-fc activations as the kernel, so tolerances stay tight."""
    in_d, hid_d, out_d = p["dims"]
    f32 = jnp.float32
    xq = x.astype(jnp.bfloat16).astype(f32)
    w1 = p["w1"][:in_d, :hid_d].astype(f32)
    w2 = p["w2"][:hid_d, :out_d].astype(f32)
    b1 = p["b1"][0, :hid_d]
    gamma = p["gamma"][0, :hid_d]
    beta = p["beta"][0, :hid_d]
    b2 = p["b2"][0, :out_d]

    h = xq @ w1 + b1
    g = _gelu(h, approximate_gelu)
    mu = jnp.mean(g, -1, keepdims=True)
    var = jnp.mean((g - mu) ** 2, -1, keepdims=True)
    n = (g - mu) * lax.rsqrt(var + eps) * gamma + beta
    nq = n.astype(jnp.bfloat16).astype(f32)
    return nq @ w2 + b2


if __name__ == "__main__":
    key = jax.random.PRNGKey(0)
    kx, kp = jax.random.split(key)

    B, input_dim, hidden_dim, output_dim = 16, 32, 64, 16
    x = jax.random.normal(kx, (B, input_dim), jnp.float32)
    raw_params = init_params(kp, input_dim, hidden_dim, output_dim)
    params = prepare_params(raw_params)

    # Default config (exact-erf GELU, f32 out).  The >=2-step rule gives
    # block_b=8 here -> grid=(2, 1): exercises the parallel batch axis and the
    # class axis even at this tiny size.
    out = jax.block_until_ready(classifier_head(x, params))
    ref = _reference(x, params)
    assert out.shape == (B, output_dim)
    err = float(jnp.max(jnp.abs(out - ref)))
    assert jnp.allclose(out, ref, atol=5e-3, rtol=5e-3), (
        f"mismatch vs reference, max abs err={err}")

    # Optional fast path: tanh GELU routed to the EUP (perf option on v6e/v7x).
    out2 = jax.block_until_ready(
        classifier_head(x, params, approximate_gelu=True))
    ref2 = _reference(x, params, approximate_gelu=True)
    err2 = float(jnp.max(jnp.abs(out2 - ref2)))
    assert jnp.allclose(out2, ref2, atol=5e-3, rtol=5e-3), (
        f"mismatch vs reference (tanh GELU), max abs err={err2}")

    print("KERNEL_OK")
</pallas_src>

<mosaic_0001>
module attributes {stable_mosaic.version = 11 : i64} {
  func.func @_classifier_head_kernel(%arg0: i32, %arg1: i32, %arg2: memref<8x128xbf16, #tpu.memory_space<vmem>>, %arg3: memref<128x128xbf16, #tpu.memory_space<vmem>>, %arg4: memref<1x128xf32, #tpu.memory_space<vmem>>, %arg5: memref<1x128xf32, #tpu.memory_space<vmem>>, %arg6: memref<1x128xf32, #tpu.memory_space<vmem>>, %arg7: memref<128x128xbf16, #tpu.memory_space<vmem>>, %arg8: memref<1x128xf32, #tpu.memory_space<vmem>>, %arg9: memref<8x128xf32, #tpu.memory_space<vmem>>, %arg10: memref<8x128xbf16, #tpu.memory_space<vmem>>) attributes {dimension_semantics = [#tpu.dimension_semantics<parallel>, #tpu.dimension_semantics<arbitrary>], iteration_bounds = array<i64: 2, 1>, scalar_prefetch = 0 : i64, scratch_operands = 1 : i64, tpu.core_type = #tpu.core_type<tc>, window_params = [{transform_indices = @transform_0, window_bounds = array<i64: 8, 128>}, {pipeline_mode = #tpu.pipeline_mode<synchronous>, transform_indices = @transform_1, window_bounds = array<i64: 128, 128>}, {pipeline_mode = #tpu.pipeline_mode<synchronous>, transform_indices = @transform_2, window_bounds = array<i64: 1, 128>}, {pipeline_mode = #tpu.pipeline_mode<synchronous>, transform_indices = @transform_3, window_bounds = array<i64: 1, 128>}, {pipeline_mode = #tpu.pipeline_mode<synchronous>, transform_indices = @transform_4, window_bounds = array<i64: 1, 128>}, {transform_indices = @transform_5, window_bounds = array<i64: 128, 128>}, {transform_indices = @transform_6, window_bounds = array<i64: 1, 128>}, {transform_indices = @transform_7, window_bounds = array<i64: 8, 128>}]} {
    %c0_i32 = arith.constant 0 : i32
    %0 = arith.cmpi eq, %arg1, %c0_i32 : i32
    %1 = arith.extui %0 : i1 to i32
    %c0_i32_0 = arith.constant 0 : i32
    %2 = arith.cmpi ne, %1, %c0_i32_0 : i32
    scf.if %2 {
      %c0_8 = arith.constant 0 : index
      %c0_9 = arith.constant 0 : index
      %10 = vector.load %arg2[%c0_8, %c0_9] : memref<8x128xbf16, #tpu.memory_space<vmem>>, vector<8x128xbf16>
      %c0_10 = arith.constant 0 : index
      %c0_11 = arith.constant 0 : index
      %11 = vector.load %arg3[%c0_10, %c0_11] : memref<128x128xbf16, #tpu.memory_space<vmem>>, vector<128x128xbf16>
      %cst_12 = arith.constant dense<0.000000e+00> : vector<8x128xf32>
      %12 = tpu.matmul %10, %11, %cst_12 {dimension_numbers = #tpu.dot_dimension_numbers<[1], [0], [0], [1], [0, 0, 1, 1], [], []>} : vector<8x128xbf16>, vector<128x128xbf16>, vector<8x128xf32> -> vector<8x128xf32>
      %c0_13 = arith.constant 0 : index
      %c0_14 = arith.constant 0 : index
      %13 = vector.load %arg4[%c0_13, %c0_14] : memref<1x128xf32, #tpu.memory_space<vmem>>, vector<1x128xf32>
      %14 = vector.broadcast %13 : vector<1x128xf32> to vector<8x128xf32>
      %15 = arith.addf %12, %14 : vector<8x128xf32>
      %cst_15 = arith.constant 5.000000e-01 : f32
      %16 = vector.broadcast %cst_15 : f32 to vector<8x128xf32>
      %17 = arith.mulf %16, %15 : vector<8x128xf32>
      %cst_16 = arith.constant 0.707106769 : f32
      %18 = vector.broadcast %cst_16 : f32 to vector<8x128xf32>
      %19 = arith.mulf %15, %18 : vector<8x128xf32>
      %20 = math.erf %19 : vector<8x128xf32>
      %cst_17 = arith.constant 1.000000e+00 : f32
      %21 = vector.broadcast %cst_17 : f32 to vector<8x128xf32>
      %22 = arith.addf %21, %20 : vector<8x128xf32>
      %23 = arith.mulf %17, %22 : vector<8x128xf32>
      %cst_18 = arith.constant dense<0.000000e+00> : vector<8xf32>
      %24 = vector.multi_reduction <add>, %23, %cst_18 [1] : vector<8x128xf32> to vector<8xf32>
      %25 = vector.shape_cast %24 : vector<8xf32> to vector<8x1xf32>
      %cst_19 = arith.constant 1.562500e-02 : f32
      %26 = vector.broadcast %cst_19 : f32 to vector<8x1xf32>
      %27 = arith.mulf %25, %26 : vector<8x1xf32>
      %28 = arith.mulf %23, %23 : vector<8x128xf32>
      %cst_20 = arith.constant dense<0.000000e+00> : vector<8xf32>
      %29 = vector.multi_reduction <add>, %28, %cst_20 [1] : vector<8x128xf32> to vector<8xf32>
      %30 = vector.shape_cast %29 : vector<8xf32> to vector<8x1xf32>
      %cst_21 = arith.constant 1.562500e-02 : f32
      %31 = vector.broadcast %cst_21 : f32 to vector<8x1xf32>
      %32 = arith.mulf %30, %31 : vector<8x1xf32>
      %33 = arith.mulf %27, %27 : vector<8x1xf32>
      %34 = arith.subf %32, %33 : vector<8x1xf32>
      %35 = vector.broadcast %27 : vector<8x1xf32> to vector<8x128xf32>
      %36 = arith.subf %23, %35 : vector<8x128xf32>
      %cst_22 = arith.constant 9.99999974E-6 : f32
      %37 = vector.broadcast %cst_22 : f32 to vector<8x1xf32>
      %38 = arith.addf %34, %37 : vector<8x1xf32>
      %39 = math.rsqrt %38 : vector<8x1xf32>
      %40 = vector.broadcast %39 : vector<8x1xf32> to vector<8x128xf32>
      %41 = arith.mulf %36, %40 : vector<8x128xf32>
      %c0_23 = arith.constant 0 : index
      %c0_24 = arith.constant 0 : index
      %42 = vector.load %arg5[%c0_23, %c0_24] : memref<1x128xf32, #tpu.memory_space<vmem>>, vector<1x128xf32>
      %43 = vector.broadcast %42 : vector<1x128xf32> to vector<8x128xf32>
      %44 = arith.mulf %41, %43 : vector<8x128xf32>
      %c0_25 = arith.constant 0 : index
      %c0_26 = arith.constant 0 : index
      %45 = vector.load %arg6[%c0_25, %c0_26] : memref<1x128xf32, #tpu.memory_space<vmem>>, vector<1x128xf32>
      %46 = vector.broadcast %45 : vector<1x128xf32> to vector<8x128xf32>
      %47 = arith.addf %44, %46 : vector<8x128xf32>
      %48 = arith.truncf %47 : vector<8x128xf32> to vector<8x128xbf16>
      %c0_27 = arith.constant 0 : index
      %c0_28 = arith.constant 0 : index
      %49 = vector.load %arg10[%c0_27, %c0_28] : memref<8x128xbf16, #tpu.memory_space<vmem>>, vector<8x128xbf16>
      tpu.vector_store %arg10[%c0_27, %c0_28], %48 {strides = array<i32>} : memref<8x128xbf16, #tpu.memory_space<vmem>>, vector<8x128xbf16>,
    } else {
    }
    %c0 = arith.constant 0 : index
    %c0_1 = arith.constant 0 : index
    %3 = vector.load %arg10[%c0, %c0_1] : memref<8x128xbf16, #tpu.memory_space<vmem>>, vector<8x128xbf16>
    %c0_2 = arith.constant 0 : index
    %c0_3 = arith.constant 0 : index
    %4 = vector.load %arg7[%c0_2, %c0_3] : memref<128x128xbf16, #tpu.memory_space<vmem>>, vector<128x128xbf16>
    %cst = arith.constant dense<0.000000e+00> : vector<8x128xf32>
    %5 = tpu.matmul %3, %4, %cst {dimension_numbers = #tpu.dot_dimension_numbers<[1], [0], [0], [1], [0, 0, 1, 1], [], []>} : vector<8x128xbf16>, vector<128x128xbf16>, vector<8x128xf32> -> vector<8x128xf32>
    %c0_4 = arith.constant 0 : index
    %c0_5 = arith.constant 0 : index
    %6 = vector.load %arg8[%c0_4, %c0_5] : memref<1x128xf32, #tpu.memory_space<vmem>>, vector<1x128xf32>
    %7 = vector.broadcast %6 : vector<1x128xf32> to vector<8x128xf32>
    %8 = arith.addf %5, %7 : vector<8x128xf32>
    %c0_6 = arith.constant 0 : index
    %c0_7 = arith.constant 0 : index
    %9 = vector.load %arg9[%c0_6, %c0_7] : memref<8x128xf32, #tpu.memory_space<vmem>>, vector<8x128xf32>
    tpu.vector_store %arg9[%c0_6, %c0_7], %8 {strides = array<i32>} : memref<8x128xf32, #tpu.memory_space<vmem>>, vector<8x128xf32>,
    return
  }
  func.func @transform_0(%arg0: i32, %arg1: i32) -> (i32, i32) {
    %c0_i32 = arith.constant 0 : i32
    %c0_i32_0 = arith.constant 0 : i32
    return %arg0, %c0_i32 : i32, i32
  }
  func.func @transform_1(%arg0: i32, %arg1: i32) -> (i32, i32) {
    %c0_i32 = arith.constant 0 : i32
    %c0_i32_0 = arith.constant 0 : i32
    %c0_i32_1 = arith.constant 0 : i32
    return %c0_i32, %c0_i32_0 : i32, i32
  }
  func.func @transform_2(%arg0: i32, %arg1: i32) -> (i32, i32) {
    %c0_i32 = arith.constant 0 : i32
    %c0_i32_0 = arith.constant 0 : i32
    %c0_i32_1 = arith.constant 0 : i32
    return %c0_i32, %c0_i32_0 : i32, i32
  }
  func.func @transform_3(%arg0: i32, %arg1: i32) -> (i32, i32) {
    %c0_i32 = arith.constant 0 : i32
    %c0_i32_0 = arith.constant 0 : i32
    %c0_i32_1 = arith.constant 0 : i32
    return %c0_i32, %c0_i32_0 : i32, i32
  }
  func.func @transform_4(%arg0: i32, %arg1: i32) -> (i32, i32) {
    %c0_i32 = arith.constant 0 : i32
    %c0_i32_0 = arith.constant 0 : i32
    %c0_i32_1 = arith.constant 0 : i32
    return %c0_i32, %c0_i32_0 : i32, i32
  }
  func.func @transform_5(%arg0: i32, %arg1: i32) -> (i32, i32) {
    %c0_i32 = arith.constant 0 : i32
    %c0_i32_0 = arith.constant 0 : i32
    return %c0_i32, %arg1 : i32, i32
  }
  func.func @transform_6(%arg0: i32, %arg1: i32) -> (i32, i32) {
    %c0_i32 = arith.constant 0 : i32
    %c0_i32_0 = arith.constant 0 : i32
    return %c0_i32, %arg1 : i32, i32
  }
  func.func @transform_7(%arg0: i32, %arg1: i32) -> (i32, i32) {
    %c0_i32 = arith.constant 0 : i32
    return %arg0, %arg1 : i32, i32
  }
}

</mosaic_0001>

<bundles_post_ra>
// kernel: tpu_custom_call.1
= control target key start
LH: loop header
LB: loop body
LE: loop exit
PB: predicated region body
PF: predicated region fallthrough
CT: control target
= control target key end

     0   :  { %12 = vsyncpa [#allocation4], 0  ;;  %s1460_s0 = inlined_call_operand.hbm [shape: bf16[16,128], index: 0, kind: input, shape index: {}]   ;;  %s1461_s1 = inlined_call_operand.hbm [shape: bf16[128,128], index: 1, kind: input, shape index: {}]   ;;  %s1462_s2 = inlined_call_operand.vmem [shape: f32[1,128], index: 2, kind: input, shape index: {}]   ;;  %s1463_s3 = inlined_call_operand.vmem [shape: f32[1,128], index: 3, kind: input, shape index: {}]   ;;  %s1464_s4 = inlined_call_operand.vmem [shape: f32[1,128], index: 4, kind: input, shape index: {}]   ;;  %s1465_s5 = inlined_call_operand.hbm [shape: bf16[128,128], index: 5, kind: input, shape index: {}]   ;;  %s1466_s6 = inlined_call_operand.vmem [shape: f32[1,128], index: 6, kind: input, shape index: {}]   ;;  %s1467_s7 = inlined_call_operand.hbm [shape: f32[16,128], index: 7, kind: output, shape index: {}]  }
   0x1   :  { %14 = vsyncpa [#allocation4 + $0x1], 0 }
   0x2   :  { %15 = vsyncpa [#allocation7], 0 }
   0x3   :  { %16 = vsyncpa [#allocation5], 0 }
   0x4   :  { %18 = vsyncpa [#allocation5 + $0x1], 0  ;;  %s1176_s24 = smov 0   ;;  %s1178_s25 = smov 0  }
   0x5   :  { %s1180_s26 = smov 0   ;;  %s1182_s27 = smov 0  }
   0x6   :  { %s1184_s28 = smov 0   ;;  %s1186_s29 = smov 0  }
   0x7 LB: > { %1474 = sst [smem:[#allocation13_spill]] %s1106_s24  ;;  %s751_s30 = sadd.s32 4294967295, %s1126_s29   ;;  %s1126_s29 = sphi %s1186_s29, %s24_s29   ;;  %s1122_s28 = sphi %s1184_s28, %s1495_s28   ;;  %s1118_s27 = sphi %s1182_s27, %s1494_s27   ;;  %s1114_s26 = sphi %s1180_s26, %s1493_s26   ;;  %s1110_s25 = sphi %s1178_s25, %s1492_s25   ;;  %s1106_s24 = sphi %s1176_s24, %s1491_s24  }
   0x8   : > { %s752_s8 = sadd.s32 4294967294, %s1126_s29   ;;  %p56_p0 = scmp.ne.s32.totalorder %s1110_s25, %s1106_s24 }
   0x9   : > { %p1210_p1 = scmp.eq.s32.totalorder %s751_s30, 0  ;;  %p1214_p2 = scmp.eq.s32.totalorder %s751_s30, 1 }
   0xa   : > { %p224_p3 = scmp.eq.s32.totalorder %s752_s8, 1  ;;  %p753_p5 = scmp.ge.s32.totalorder %s1126_s29, 1 }
   0xb   : > { %s1475_s9 = scalar_select %p1210_p1, 1, 0 }
   0xc   : > { %p1220_p4 = por %p1210_p1, %p56_p0  ;;  %p1225_p6 = por %p224_p3, %p56_p0 }
   0xd   : > { %p231_p7 = scmp.lt.s32.totalorder %s1126_s29, 3  ;;  %s1128_s14 = smov [#allocation6]  }
   0xe   : > { %s1477_s11 = scalar_select %p1220_p4, 1, 0 }
   0xf   : > { %s1478_s12 = scalar_select %p1225_p6, 1, 0 }
  0x10   : > { %p1230_p8 = pnand %p753_p5, %p231_p7  ;;  %s243_s15 = sshll.u32 %s1128_s14, 4  ;;  %s1234_s15 = int_to_ptr.vmem [resolvable:$true] %s243_s15 }
  0x11   : > { %1479 = sst [smem:[#allocation14_spill]] %s1478_s12  ;;  %s1129_s17 = smov [#allocation8]  }
  0x12   : > { %p859_p9 = pneg %p1230_p8  ;;  %s267_s18 = sshll.u32 %s1129_s17, 4  ;;  %s1245_s18 = int_to_ptr.vmem [resolvable:$true] %s267_s18 }
  0x13   : > { %s954_s21 = scalar_lea.hbm %s1461_s1, 1024 }
  0x14   : > { %p1241_p11 = pnand %p859_p9, %p1210_p1  ;;  %p955_p12 = scmp.ne.s32.totalorder %s1461_s1, %s954_s21 }
  0x15   : > { %p961_p5 = scmp.lt.u32.totalorder %s954_s21, %s1461_s1 }
  0x16   : > { %p956_p13 = pneg %p1241_p11 }
  0x18   : > { %p957_p0 = pnand %p956_p13, %p955_p12 }
  0x1a   : > { %p958_p3 = pneg %p957_p0 }
  0x1c   : > { %p963_p7 = pnand %p961_p5, %p958_p3 }
  0x1e   : > { %966 = shalt.err (!%p963_p7)
}
  0x1f   : > { %s967_s14 = scalar_lea.vmem %s1234_s15, 1024  ;;  %p975_p1 = scmp.lt.s32.totalorder %s1234_s15, %s1234_s15 }
  0x20   : > { %p968_p9 = scmp.ne.s32.totalorder %s1234_s15, %s967_s14  ;;  %p976_p12 = scmp.lt.s32.totalorder %s967_s14, %s967_s14 }
  0x22   : > { %p970_p10 = pnand %p968_p9, %p956_p13  ;;  %p977_p0 = por %p976_p12, %p975_p1 }
  0x24   : > { %p971_p6 = pneg %p970_p10 }
  0x26   : > { %p978_p4 = pnand %p977_p0, %p971_p6 }
  0x28   : > { %981 = shalt.err (!%p978_p4)
}
  0x29   : > { %s1130_s17 = smov 64   ;;  %s1131_s19 = smov 4  }
  0x2a   : > { %862 = dma.hbm_to_vmem [thread:$0]  (!%p1241_p11), %s1461_s1, 1024, %s1234_s15, [#allocation7], %s1130_s17, %s1130_s17, %s1131_s19  }
  0x2b   : > { %s982_s30 = scalar_lea.hbm %s1465_s5, 1024 }
  0x2c   : > { %p983_p1 = scmp.ne.s32.totalorder %s1465_s5, %s982_s30  ;;  %p989_p10 = scmp.lt.u32.totalorder %s982_s30, %s1465_s5 }
  0x2e   : > { %p985_p4 = pnand %p983_p1, %p956_p13 }
  0x30   : > { %p986_p6 = pneg %p985_p4 }
  0x32   : > { %p991_p3 = pnand %p989_p10, %p986_p6 }
  0x34   : > { %994 = shalt.err (!%p991_p3)
}
  0x35   : > { %s995_s15 = scalar_lea.vmem %s1245_s18, 1024  ;;  %p1003_p12 = scmp.lt.s32.totalorder %s1245_s18, %s1245_s18 }
  0x36   : > { %p996_p5 = scmp.ne.s32.totalorder %s1245_s18, %s995_s15  ;;  %p1004_p0 = scmp.lt.s32.totalorder %s995_s15, %s995_s15 }
  0x38   : > { %p998_p7 = pnand %p996_p5, %p956_p13  ;;  %p1005_p1 = por %p1004_p0, %p1003_p12 }
  0x3a   : > { %p999_p9 = pneg %p998_p7 }
  0x3c   : > { %p1006_p4 = pnand %p1005_p1, %p999_p9 }
  0x3e   : > { %1009 = shalt.err (!%p1006_p4)
}
  0x3f   : > { %865 = dma.hbm_to_vmem [thread:$0]  (!%p1241_p11), %s1465_s5, 1024, %s1245_s18, [#allocation7], %s1130_s17, %s1130_s17, %s1131_s19  }
  0x40   : > { %s36_s20 = sadd.s32 1, %s1122_s28  ;;  %s43_s21 = sadd.s32 1, %s1114_s26 }
  0x41   : > { %p38_p13 = scmp.ge.s32.totalorder %s36_s20, 2  ;;  %p50_p6 = scmp.ne.s32.totalorder %s1114_s26, %s1110_s25 }
  0x42   : > { %p51_p10 = scmp.eq.s32.totalorder %s1126_s29, 0  ;;  %p876_p3 = scmp.lt.s32.totalorder %s1126_s29, 2 }
  0x43   : > { %s1497_s20 = smov (%p38_p13, %s36_s20), 0  ;;  %p1309_p7 = por %p1214_p2, %p50_p6 }
  0x44   : > { %p52_p5 = por %p51_p10, %p50_p6  ;;  %s40_s22 = ssub.s32 %s1122_s28, %s1497_s20 }
  0x45   : > { %s1482_s16 = scalar_select %p1309_p7, 1, 0 }
  0x46   : > { %s287_s23 = sand.u32 1, %s1114_s26   ;;  %p41_p9 = scmp.eq.s32.totalorder %s40_s22, 0 }
  0x47   : > { %s758_s18 = sshll.u32 %s287_s23, 2  ;;  %s759_s17 = sshll.u32 %s1122_s28, 6 }
  0x48   : > { %s1318_s19 = scalar_select %p41_p9, %s1114_s26, %s43_s21  }
  0x49   : > { %s1323_s14 = scalar_lea.hbm %s1460_s0, %s759_s17  ;;  %s291_s10 = scalar_lea.vmem [#allocation3], %s758_s18 }
  0x4a   : > { %s298_s15 = sshll.u32 %s291_s10, 4  ;;  %p1327_p2 = pnand %p876_p3, %p52_p5  ;;  %s1331_s15 = int_to_ptr.vmem [resolvable:$true] %s298_s15 }
  0x4b   : > { %s288_s12 = scalar_lea.sflag [#allocation4], %s287_s23  ;;  %s1010_s21 = scalar_lea.hbm %s1323_s14, 64 }
  0x4c   : > { %p1011_p11 = scmp.ne.s32.totalorder %s1323_s14, %s1010_s21  ;;  %p1012_p12 = pneg %p1327_p2 }
  0x4d   : > { %s1015_s17 = scalar_lea.hbm %s1460_s0, 128  ;;  %p1016_p4 = scmp.lt.u32.totalorder %s1323_s14, %s1460_s0 }
  0x4e   : > { %p1013_p0 = pnand %p1012_p12, %p1011_p11  ;;  %p1017_p13 = scmp.lt.u32.totalorder %s1015_s17, %s1010_s21 }
  0x4f   : > { %p1019_p10 = scmp.lt.u32.totalorder %s1010_s21, %s1323_s14 }
  0x50   : > { %p1014_p1 = pneg %p1013_p0  ;;  %p1018_p6 = por %p1017_p13, %p1016_p4 }
  0x52   : > { %p1020_p3 = por %p1019_p10, %p1018_p6 }
  0x54   : > { %p1021_p5 = pnand %p1020_p3, %p1014_p1 }
  0x56   : > { %1024 = shalt.err (!%p1021_p5)
}
  0x57   : > { %s1025_s23 = scalar_lea.vmem %s1331_s15, 64  ;;  %s1132_s10 = smov [#allocation3]  }
  0x58   : > { %p1026_p9 = scmp.ne.s32.totalorder %s1331_s15, %s1025_s23  ;;  %s1030_s22 = sshll.u32 %s1132_s10, 4  ;;  %s1031_s22 = int_to_ptr.vmem [resolvable:$false] %s1030_s22 }
  0x59   : > { %s1032_s18 = scalar_lea.vmem %s1031_s22, 128  ;;  %p1033_p7 = scmp.lt.s32.totalorder %s1331_s15, %s1031_s22 }
  0x5a   : > { %p1028_p11 = pnand %p1026_p9, %p1012_p12  ;;  %p1034_p4 = scmp.lt.s32.totalorder %s1032_s18, %s1025_s23 }
  0x5c   : > { %p1029_p0 = pneg %p1028_p11  ;;  %p1035_p13 = por %p1034_p4, %p1033_p7 }
  0x5e   : > { %p1036_p6 = pnand %p1035_p13, %p1029_p0 }
  0x60   : > { %1039 = shalt.err (!%p1036_p6)
}
  0x61   : > { %869 = dma.hbm_to_vmem [thread:$0]  (!%p1327_p2), %s1323_s14, 64, %s1331_s15, %s288_s12  }
  0x62   : > { %307 = sbr.rel (%p1230_p8) target bundleno = 781 (0x30d), region = 48  ;;  %s1361_s21 = sand.u32 (!%p1230_p8), 1, %s1110_s25  }
  0x63   : > { %s761_s17 = sshll.u32 (!%p1230_p8), %s1361_s21, 2  ;;  %s310_s30 = scalar_lea.sflag (!%p1230_p8), [#allocation4], %s1361_s21 }
  0x64   : > { %s1365_s8 = scalar_lea.vmem (!%p1230_p8), [#allocation3], %s761_s17  ;;  %p1484_p7 = scmp.ne.s32.totalorder (!%p1230_p8), %s1477_s11, 0 }
  0x69   : > { %1093 = dma.done.wait (%p1484_p7), %s310_s30, 64  }
  0x6a   : > { %1095 = vsyncadd (%p1484_p7), %s310_s30, 4294967232  ;;  %p1485_p2 = scmp.ne.s32.totalorder %s1475_s9, 0 }
  0x6c   : > { %1097 = dma.done.wait (%p1485_p2), [#allocation7], 2048  }
  0x6d   : > { %1099 = vsyncadd (%p1485_p2), [#allocation7], 4294965248  ;;  %v1133_v0 = vmov 0.0   ;;  %vm1134_vm0 = vmmov 0   ;;  %v934_v1 = vld [vmem:[#allocation6] sm:$0xff]   ;;  %v935_v2 = vld [vmem:[#allocation6 + $0x8] sm:$0xff]  }
  0x6e   : > { %807 = vmatprep.subr.bf16.mxu0 %v1133_v0  ;;  %823 = vmatprep.mubr.msk.bf16.mxu0 %vm1134_vm0, %v1133_v0  ;;  %v936_v3 = vld [vmem:[#allocation6 + $0x10] sm:$0xff]   ;;  %v937_v4 = vld [vmem:[#allocation6 + $0x18] sm:$0xff]   ;;  %v938_v5 = vld [vmem:[#allocation6 + $0x20] sm:$0xff]   ;;  %s764_s12 = sshll.u32 %s1361_s21, 3  ;;  %s786_s22 = sshll.u32 %s1118_s27, 7 }
  0x6f   : > { %827 = vmatprep.subr.bf16.mxu1 %v1133_v0  ;;  %843 = vmatprep.mubr.msk.bf16.mxu1 %vm1134_vm0, %v1133_v0  ;;  %v939_v6 = vld [vmem:[#allocation6 + $0x28] sm:$0xff]   ;;  %v940_v7 = vld [vmem:[#allocation6 + $0x30] sm:$0xff]   ;;  %v941_v8 = vld [vmem:[#allocation6 + $0x38] sm:$0xff]   ;;  %s354_s18 = scalar_lea.vmem [#allocation9], %s764_s12  ;;  %s1411_s9 = scalar_lea.hbm %s1467_s7, %s786_s22 }
  0x70   : > { %808 = vmatpush3.bf16.msra.mxu0 %v934_v1  ;;  %v363_v9 = vld [vmem:[%s1365_s8] sm:$0xf]  ;;  %v765_v10 = vld [vmem:[%s1462_s2] ss:$0 sm:$0xff]  ;;  %v942_v22 = vld [vmem:[#allocation8] sm:$0xff]   ;;  %s639_s17 = sshll.u32 %s354_s18, 4  ;;  %s1413_s17 = int_to_ptr.vmem [resolvable:$true] %s639_s17 }
  0x71   : > { %809 = vmatprep.subr.bf16.mxu0 %v1133_v0  ;;  %828 = vmatpush3.bf16.msra.mxu1 %v942_v22  ;;  %v943_v23 = vld [vmem:[#allocation8 + $0x8] sm:$0xff]   ;;  %v944_v24 = vld [vmem:[#allocation8 + $0x10] sm:$0xff]   ;;  %v945_v25 = vld [vmem:[#allocation8 + $0x18] sm:$0xff]   ;;  %s625_s11 = scalar_lea.sflag [#allocation5], %s1361_s21  ;;  %s1040_s27 = scalar_lea.vmem %s1413_s17, 128 }
  0x72   : > { %829 = vmatprep.subr.bf16.mxu1 %v1133_v0  ;;  %v946_v26 = vld [vmem:[#allocation8 + $0x20] sm:$0xff]   ;;  %v947_v27 = vld [vmem:[#allocation8 + $0x28] sm:$0xff]   ;;  %v948_v28 = vld [vmem:[#allocation8 + $0x30] sm:$0xff]   ;;  %p1041_p8 = scmp.ne.s32.totalorder %s1413_s17, %s1040_s27  ;;  %p1486_p12 = scmp.ne.s32.totalorder %s1482_s16, 0 }
  0x73   : > { %v949_v29 = vld [vmem:[#allocation8 + $0x38] sm:$0xff]   ;;  %v774_v39 = vld [vmem:[%s1463_s3] ss:$0 sm:$0xff]  ;;  %s1135_s13 = smov [#allocation9]  }
  0x74   : > { %810 = vmatpush3.bf16.msra.mxu0 %v935_v2  ;;  %v775_v41 = vld [vmem:[%s1464_s4] ss:$0 sm:$0xff]  ;;  %p1042_p1 = pnand %p1041_p8, %p1486_p12  ;;  %s1044_s14 = sshll.u32 %s1135_s13, 4  ;;  %s1045_s14 = int_to_ptr.vmem [resolvable:$false] %s1044_s14 }
  0x75   : > { %811 = vmatprep.subr.bf16.mxu0 %v1133_v0  ;;  %830 = vmatpush3.bf16.msra.mxu1 %v943_v23  ;;  %v776_v46 = vld [vmem:[%s1466_s6] ss:$0 sm:$0xff]  ;;  %s1046_s15 = scalar_lea.vmem %s1045_s14, 256  ;;  %p1047_p3 = scmp.lt.s32.totalorder %s1413_s17, %s1045_s14 }
  0x76   : > { %831 = vmatprep.subr.bf16.mxu1 %v1133_v0  ;;  %p1043_p10 = pneg %p1042_p1  ;;  %p1048_p5 = scmp.lt.s32.totalorder %s1046_s15, %s1040_s27 }
  0x78   : > { %812 = vmatpush3.bf16.msra.mxu0 %v936_v3  ;;  %p1049_p9 = por %p1048_p5, %p1047_p3 }
  0x79   : > { %813 = vmatprep.subr.bf16.mxu0 %v1133_v0  ;;  %832 = vmatpush3.bf16.msra.mxu1 %v944_v24 }
  0x7a   : > { %833 = vmatprep.subr.bf16.mxu1 %v1133_v0  ;;  %p1050_p11 = pnand %p1049_p9, %p1043_p10 }
  0x7c   : > { %814 = vmatpush3.bf16.msra.mxu0 %v937_v4 }
  0x7d   : > { %815 = vmatprep.subr.bf16.mxu0 %v1133_v0  ;;  %834 = vmatpush3.bf16.msra.mxu1 %v945_v25 }
  0x7e   : > { %835 = vmatprep.subr.bf16.mxu1 %v1133_v0 }
  0x80   : > { %816 = vmatpush3.bf16.msra.mxu0 %v938_v5 }
  0x81   : > { %817 = vmatprep.subr.bf16.mxu0 %v1133_v0  ;;  %836 = vmatpush3.bf16.msra.mxu1 %v946_v26 }
  0x82   : > { %837 = vmatprep.subr.bf16.mxu1 %v1133_v0 }
  0x84   : > { %818 = vmatpush3.bf16.msra.mxu0 %v939_v6 }
  0x85   : > { %819 = vmatprep.subr.bf16.mxu0 %v1133_v0  ;;  %838 = vmatpush3.bf16.msra.mxu1 %v947_v27 }
  0x86   : > { %839 = vmatprep.subr.bf16.mxu1 %v1133_v0 }
  0x88   : > { %820 = vmatpush3.bf16.msra.mxu0 %v940_v7 }
  0x89   : > { %821 = vmatprep.subr.bf16.mxu0 %v1133_v0  ;;  %840 = vmatpush3.bf16.msra.mxu1 %v948_v28 }
  0x8a   : > { %841 = vmatprep.subr.bf16.mxu1 %v1133_v0 }
  0x8c   : > { %822 = vmatpush3.bf16.msra.mxu0 %v941_v8 }
  0x8d   : > { %842 = vmatpush3.bf16.msra.mxu1 %v949_v29 }
  0x8f   : > { %824 = vmatmul.mubr.bf16.vlgmr.msra.gmra.mrb[0].mxu0 %v363_v9 }
 0x162   : > { %v469_v11 = vpop.f32.mrb[0].mxu0 }
 0x163   : > { %v470_v12 = vadd.f32 %v765_v10, %v469_v11  ;;  %v825_v13 = vpop.f32.mrb[1].mxu0 }
 0x164   : > { %v472_v14 = vpop.f32.mrb[2].mxu0 }
 0x165   : > { %v476_v15 = vmul.f32 0.70710677, %v470_v12  ;;  %v826_v16 = vpop.f32.mrb[3].mxu0  ;;  %v475_v18 = vmul.f32 0.5, %v470_v12 }
 0x167   : > { %950 = verf.f32 %v476_v15 }
 0x171   : > { %v951_v17 = vpop.eup %950 }
 0x172   : > { %v478_v19 = vadd.f32 1.0, %v951_v17 }
 0x174   : > { %v479_v20 = vmul.f32 %v478_v19, %v475_v18 }
 0x176   : > { %480 = vadd.xlane.f32.xlu0 %v479_v20  ;;  %v483_v21 = vmul.f32 %v479_v20, %v479_v20 }
 0x17a   : > { %484 = vadd.xlane.f32.xlu0 %v483_v21 }
 0x203   : > { %v481_v30 = vpop.xlane.xlu0 %480 }
 0x204   : > { %v482_v31 = vmul.f32 0.015625, %v481_v30 }
 0x206   : > { %v487_v33 = vmul.f32 %v482_v31, %v482_v31  ;;  %v489_v37 = vsub.f32 %v479_v20, %v482_v31 }
 0x207   : > { %v485_v32 = vpop.xlane.xlu0 %484 }
 0x208   : > { %v486_v34 = vmul.f32 0.015625, %v485_v32 }
 0x20a   : > { %v488_v35 = vsub.f32 %v486_v34, %v487_v33 }
 0x20c   : > { %v490_v36 = vadd.f32 1e-05, %v488_v35 }
 0x20e   : > { %952 = vrsqrt.f32 %v490_v36 }
 0x218   : > { %v953_v38 = vpop.eup %952 }
 0x219   : > { %v492_v40 = vmul.f32 %v953_v38, %v489_v37 }
 0x21b   : > { %v500_v42 = vmul.f32 %v774_v39, %v492_v40 }
 0x21d   : > { %v508_v43 = vadd.f32 %v775_v41, %v500_v42 }
 0x21f   : > { %v509_v44 = vpack.c.bf16 %v508_v43, %v508_v43 }
 0x221   : > { %510 = vst [vmem:[#allocation2] sm:$0xf] %v509_v44 }
 0x228   : > { %v511_v45 = vld [vmem:[#allocation2] sm:$0xf] }
 0x229   : > { %844 = vmatmul.mubr.bf16.vlgmr.msra.gmra.mrb[0].mxu1 %v511_v45 }
 0x2fc   : > { %v617_v47 = vpop.f32.mrb[0].mxu1 }
 0x2fd   : > { %v618_v48 = vadd.f32 %v776_v46, %v617_v47  ;;  %v845_v49 = vpop.f32.mrb[1].mxu1 }
 0x2fe   : > { %v620_v50 = vpop.f32.mrb[2].mxu1 }
 0x2ff   : > { %623 = vst [vmem:[%s354_s18] sm:$0xff] %v618_v48  ;;  %v846_v51 = vpop.f32.mrb[3].mxu1 }
 0x300   : > { %1053 = shalt.err (!%p1050_p11)
}
 0x301   : > { %s1054_s21 = scalar_lea.hbm %s1411_s9, 128  ;;  %s1058_s23 = scalar_lea.hbm %s1467_s7, 256 }
 0x302   : > { %p1055_p0 = scmp.ne.s32.totalorder %s1411_s9, %s1054_s21  ;;  %p1059_p6 = scmp.lt.u32.totalorder %s1411_s9, %s1467_s7 }
 0x303   : > { %p1060_p7 = scmp.lt.u32.totalorder %s1058_s23, %s1054_s21  ;;  %p1062_p8 = scmp.lt.u32.totalorder %s1054_s21, %s1411_s9 }
 0x304   : > { %p1056_p4 = pnand %p1055_p0, %p1486_p12 }
 0x305   : > { %p1061_p2 = por %p1060_p7, %p1059_p6 }
 0x306   : > { %p1057_p13 = pneg %p1056_p4 }
 0x307   : > { %p1063_p1 = por %p1062_p8, %p1061_p2 }
 0x309   : > { %p1064_p10 = pnand %p1063_p1, %p1057_p13 }
 0x30b   : > { %1067 = shalt.err (!%p1064_p10)
}
 0x30c   : > { %857 = dma.vmem_to_hbm [thread:$0]  (%p1486_p12), %s1413_s17, 128, %s1411_s9, %s625_s11  }
 0x30d PF: > { %s1487_s18 = sld [smem:[#allocation13_spill]]  ;;  %s1488_s30 = sld [smem:[#allocation14_spill]] }
 0x30e   : > { %p1490_p5 = scmp.ge.s32.totalorder %s1126_s29, 2 }
 0x313   : > { %s651_s8 = sand.u32 1, %s1487_s18   ;;  %p1489_p3 = scmp.ne.s32.totalorder %s1488_s30, 0 }
 0x314   : > { %s652_s27 = scalar_lea.sflag [#allocation5], %s651_s8 }
 0x315   : > { %p871_p9 = pnand %p1490_p5, %p1489_p3 }
 0x317   : > { %1101 = dma.done.wait (!%p871_p9), %s652_s27, 128  }
 0x318   : > { %1103 = vsyncadd (!%p871_p9), %s652_s27, 4294967168  ;;  %s24_s29 = sadd.s32 1, %s1126_s29   ;;  %s1491_s24 = smov %s1110_s25 }
 0x319   : > { %p21_p11 = scmp.ge.s32.totalorder %s24_s29, 4   ;;  %s1492_s25 = smov %s1114_s26 }
 0x31a   : > { %s1493_s26 = smov %s1318_s19  ;;  %s1494_s27 = smov %s1122_s28 }
 0x31b   : > { %s1495_s28 = smov %s1497_s20  ;;  %23 = sbr.rel (!%p21_p11) target bundleno = 7 (0x7), region = 109 }
 0x322   :  { %657 = vsyncpa [#allocation4], 1 }
 0x323   :  { %659 = vsyncpa [#allocation4 + $0x1], 1 }
 0x324   :  { %660 = vsyncpa [#allocation7], 1 }
 0x325   :  { %661 = vsyncpa [#allocation5], 1 }
 0x326   :  { %663 = vsyncpa [#allocation5 + $0x1], 1 }

</bundles_post_ra>
